<compile_context>
chip_gen: v7x
topology: tpu7x:2x2x1
jax: 0.10.0
libtpu: 0.0.40
codegen_flags: <defaults>
</compile_context>

<pallas_src>
import functools

import jax
import jax.numpy as jnp
from jax import lax
from jax.experimental import pallas as pl
from jax.experimental.pallas import tpu as pltpu

_LANES = 128
_MAX_TILE_ROWS = 8192           # 8192 * 128 * 4 B = 4 MiB per f32 input tile


def _sublanes_for(dtype):
    return {1: 32, 2: 16}.get(jnp.dtype(dtype).itemsize, 8)


def _round_up(x, m):
    return -(-x // m) * m


def _soft_iou_kernel(pred_ref, tgt_ref, out_ref,
                     inter_acc, p_acc, t_acc,
                     *, tile_rows, tail_count, needs_mask, smooth):
    step = pl.program_id(0)
    n_steps = pl.num_programs(0)

    @pl.when(step == 0)
    def _init():
        inter_acc[...] = jnp.zeros_like(inter_acc)
        p_acc[...] = jnp.zeros_like(p_acc)
        t_acc[...] = jnp.zeros_like(t_acc)

    def _accumulate(apply_mask):
        p = jax.nn.sigmoid(pred_ref[...].astype(jnp.float32))
        t = tgt_ref[...].astype(jnp.float32)
        if apply_mask:
            # Only the final block is ever masked: compare the block-local flat
            # index against the (Python-constant) number of valid elements in
            # that block.  Handles both wrapper tail-padding and the garbage
            # rows of a ragged last DMA.
            row = lax.broadcasted_iota(jnp.int32, (tile_rows, _LANES), 0)
            lane = lax.broadcasted_iota(jnp.int32, (tile_rows, _LANES), 1)
            valid = (row * _LANES + lane) < tail_count
            p = jnp.where(valid, p, 0.0)
            t = jnp.where(valid, t, 0.0)
        # Split-sum onto one (8,128) vreg per accumulator: pure VPU adds in the
        # hot loop; the cross-lane reduction is deferred to the finalize step.
        n_sub = tile_rows // 8
        inter_acc[...] += jnp.sum((p * t).reshape(n_sub, 8, _LANES), axis=0)
        p_acc[...] += jnp.sum(p.reshape(n_sub, 8, _LANES), axis=0)
        t_acc[...] += jnp.sum(t.reshape(n_sub, 8, _LANES), axis=0)

    if needs_mask:
        @pl.when(step < n_steps - 1)
        def _body():
            _accumulate(False)

        @pl.when(step == n_steps - 1)
        def _tail():
            _accumulate(True)
    else:
        _accumulate(False)

    @pl.when(step == n_steps - 1)
    def _finalize():
        inter = jnp.sum(inter_acc[...], keepdims=True)   # (1, 1)
        psum = jnp.sum(p_acc[...], keepdims=True)
        tsum = jnp.sum(t_acc[...], keepdims=True)
        iou = (inter + smooth) / (psum + tsum - inter + smooth)
        out_ref[...] = 1.0 - iou


def soft_iou_loss(pred, target, smooth=1.0, *, max_tile_rows=_MAX_TILE_ROWS):
    """Pallas implementation of SoftIoULoss.forward."""
    if pred.ndim > 4:
        pred = jnp.squeeze(pred, axis=2)
    assert pred.shape == target.shape, "pred/target shapes must match"

    total = pred.size
    sub = max(_sublanes_for(pred.dtype), _sublanes_for(target.dtype))
    chunk = sub * _LANES

    flat_p = pred.reshape(-1)       # free reshapes (views)
    flat_t = target.reshape(-1)
    if total % chunk:
        # Only non-(sublane*128)-aligned sizes pay this one pad; the padded
        # elements are excluded by the in-kernel mask (pad value irrelevant).
        pad = chunk - total % chunk
        flat_p = jnp.pad(flat_p, (0, pad))
        flat_t = jnp.pad(flat_t, (0, pad))

    rows = flat_p.shape[0] // _LANES            # multiple of `sub`
    p2 = flat_p.reshape(rows, _LANES)           # lane-dense layout, free
    t2 = flat_t.reshape(rows, _LANES)

    tile_rows = min(_round_up(max_tile_rows, sub), rows)
    n_steps = -(-rows // tile_rows)
    needs_mask = n_steps * tile_rows * _LANES > total
    tail_count = total - (n_steps - 1) * tile_rows * _LANES

    # TODO(synk): on v7x, split the row range across both TensorCores with a
    # leading "parallel" grid axis + per-core partial sums combined in the
    # wrapper (no benefit on single-TC v5e/v6e).
    out = pl.pallas_call(
        functools.partial(
            _soft_iou_kernel,
            tile_rows=tile_rows,
            tail_count=tail_count,
            needs_mask=needs_mask,
            smooth=float(smooth),
        ),
        out_shape=jax.ShapeDtypeStruct((1, 1), jnp.float32),
        grid=(n_steps,),
        in_specs=[
            pl.BlockSpec((tile_rows, _LANES), lambda i: (i, 0)),
            pl.BlockSpec((tile_rows, _LANES), lambda i: (i, 0)),
        ],
        out_specs=pl.BlockSpec((1, 1), lambda i: (0, 0)),
        scratch_shapes=[pltpu.VMEM((8, _LANES), jnp.float32)] * 3,
        compiler_params=pltpu.CompilerParams(
            dimension_semantics=("arbitrary",),
            vmem_limit_bytes=48 * 1024 * 1024,
        ),
    )(p2, t2)

    # `.mean()` in the reference acts on a scalar -> identity.
    return out[0, 0]


def _reference(pred, target, smooth=1.0):
    """Pure-JAX reference mirroring the PyTorch semantics."""
    if pred.ndim > 4:
        pred = jnp.squeeze(pred, axis=2)
    p = jax.nn.sigmoid(pred.astype(jnp.float32))
    t = target.astype(jnp.float32)
    inter = jnp.sum(p * t)
    iou = (inter + smooth) / (jnp.sum(p) + jnp.sum(t) - inter + smooth)
    return 1.0 - iou


if __name__ == "__main__":
    key = jax.random.PRNGKey(0)
    k1, k2, k3, k4, k5, k6 = jax.random.split(key, 6)

    # Main test: (N, C, H, W) shapes implied by the module. Aligned size ->
    # zero-copy wrapper path, single grid step.
    N, C, H, W = 2, 4, 16, 16
    pred = jax.random.normal(k1, (N, C, H, W), dtype=jnp.float32)
    target = (jax.random.uniform(k2, (N, C, H, W)) > 0.5).astype(jnp.float32)
    loss = soft_iou_loss(pred, target)
    jax.block_until_ready(loss)
    ref = _reference(pred, target)
    assert jnp.allclose(loss, ref, atol=1e-5, rtol=1e-5), (loss, ref)

    # Non-128-aligned element count -> small wrapper pad + in-kernel mask.
    pred_b = jax.random.normal(k3, (2, 3, 10, 10), dtype=jnp.float32)
    target_b = (jax.random.uniform(k4, (2, 3, 10, 10)) > 0.5).astype(jnp.float32)
    loss_b = soft_iou_loss(pred_b, target_b)
    ref_b = _reference(pred_b, target_b)
    assert jnp.allclose(loss_b, ref_b, atol=1e-5, rtol=1e-5), (loss_b, ref_b)

    # Multi-step grid + ragged last block (tiny max_tile_rows forces >1 step).
    pred_c = jax.random.normal(k5, (5, 4, 16, 16), dtype=jnp.float32)
    target_c = (jax.random.uniform(k6, (5, 4, 16, 16)) > 0.5).astype(jnp.float32)
    loss_c = soft_iou_loss(pred_c, target_c, max_tile_rows=16)
    ref_c = _reference(pred_c, target_c)
    assert jnp.allclose(loss_c, ref_c, atol=1e-5, rtol=1e-5), (loss_c, ref_c)

    # bf16 predictions streamed natively (f32 cast happens in-kernel).
    loss_d = soft_iou_loss(pred.astype(jnp.bfloat16), target)
    ref_d = _reference(pred.astype(jnp.bfloat16), target)
    assert jnp.allclose(loss_d, ref_d, atol=1e-5, rtol=1e-5), (loss_d, ref_d)

    # 5-D input exercises the squeeze(dim=2) branch.
    pred_e = pred.reshape(N, C, 1, H, W)
    loss_e = soft_iou_loss(pred_e, target)
    ref_e = _reference(pred_e, target)
    assert jnp.allclose(loss_e, ref_e, atol=1e-5, rtol=1e-5), (loss_e, ref_e)

    jax.block_until_ready((loss, loss_b, loss_c, loss_d, loss_e))
    print("KERNEL_OK")
</pallas_src>

<mosaic_0001>
module attributes {stable_mosaic.version = 11 : i64} {
  func.func @_soft_iou_kernel(%arg0: i32, %arg1: memref<16x128xf32, #tpu.memory_space<vmem>>, %arg2: memref<16x128xf32, #tpu.memory_space<vmem>>, %arg3: memref<1x1xf32, #tpu.memory_space<vmem>>, %arg4: memref<8x128xf32, #tpu.memory_space<vmem>>, %arg5: memref<8x128xf32, #tpu.memory_space<vmem>>, %arg6: memref<8x128xf32, #tpu.memory_space<vmem>>) attributes {dimension_semantics = [#tpu.dimension_semantics<arbitrary>], iteration_bounds = array<i64: 1>, scalar_prefetch = 0 : i64, scratch_operands = 3 : i64, tpu.core_type = #tpu.core_type<tc>, window_params = [{transform_indices = @transform_0, window_bounds = array<i64: 16, 128>}, {transform_indices = @transform_1, window_bounds = array<i64: 16, 128>}, {pipeline_mode = #tpu.pipeline_mode<synchronous>, transform_indices = @transform_2, window_bounds = array<i64: 1, 1>}]} {
    %c0_i32 = arith.constant 0 : i32
    %0 = arith.cmpi eq, %arg0, %c0_i32 : i32
    %1 = arith.extui %0 : i1 to i32
    %c0_i32_0 = arith.constant 0 : i32
    %2 = arith.cmpi ne, %1, %c0_i32_0 : i32
    scf.if %2 {
      %cst_21 = arith.constant 0.000000e+00 : f32
      %29 = vector.broadcast %cst_21 : f32 to vector<8x128xf32>
      %c0_22 = arith.constant 0 : index
      %c0_23 = arith.constant 0 : index
      %30 = vector.load %arg4[%c0_22, %c0_23] : memref<8x128xf32, #tpu.memory_space<vmem>>, vector<8x128xf32>
      tpu.vector_store %arg4[%c0_22, %c0_23], %29 {strides = array<i32>} : memref<8x128xf32, #tpu.memory_space<vmem>>, vector<8x128xf32>,
      %cst_24 = arith.constant 0.000000e+00 : f32
      %31 = vector.broadcast %cst_24 : f32 to vector<8x128xf32>
      %c0_25 = arith.constant 0 : index
      %c0_26 = arith.constant 0 : index
      %32 = vector.load %arg5[%c0_25, %c0_26] : memref<8x128xf32, #tpu.memory_space<vmem>>, vector<8x128xf32>
      tpu.vector_store %arg5[%c0_25, %c0_26], %31 {strides = array<i32>} : memref<8x128xf32, #tpu.memory_space<vmem>>, vector<8x128xf32>,
      %cst_27 = arith.constant 0.000000e+00 : f32
      %33 = vector.broadcast %cst_27 : f32 to vector<8x128xf32>
      %c0_28 = arith.constant 0 : index
      %c0_29 = arith.constant 0 : index
      %34 = vector.load %arg6[%c0_28, %c0_29] : memref<8x128xf32, #tpu.memory_space<vmem>>, vector<8x128xf32>
      tpu.vector_store %arg6[%c0_28, %c0_29], %33 {strides = array<i32>} : memref<8x128xf32, #tpu.memory_space<vmem>>, vector<8x128xf32>,
    } else {
    }
    %c0 = arith.constant 0 : index
    %c0_1 = arith.constant 0 : index
    %3 = vector.load %arg1[%c0, %c0_1] : memref<16x128xf32, #tpu.memory_space<vmem>>, vector<16x128xf32>
    %4 = arith.negf %3 : vector<16x128xf32>
    %5 = math.exp %4 : vector<16x128xf32>
    %cst = arith.constant 1.000000e+00 : f32
    %6 = vector.broadcast %cst : f32 to vector<16x128xf32>
    %7 = arith.addf %6, %5 : vector<16x128xf32>
    %8 = arith.divf %6, %7 : vector<16x128xf32>
    %c0_2 = arith.constant 0 : index
    %c0_3 = arith.constant 0 : index
    %9 = vector.load %arg2[%c0_2, %c0_3] : memref<16x128xf32, #tpu.memory_space<vmem>>, vector<16x128xf32>
    %c0_4 = arith.constant 0 : index
    %c0_5 = arith.constant 0 : index
    %10 = vector.load %arg4[%c0_4, %c0_5] : memref<8x128xf32, #tpu.memory_space<vmem>>, vector<8x128xf32>
    %11 = arith.mulf %8, %9 : vector<16x128xf32>
    %12 = vector.shape_cast %11 : vector<16x128xf32> to vector<2x8x128xf32>
    %cst_6 = arith.constant dense<0.000000e+00> : vector<8x128xf32>
    %13 = vector.multi_reduction <add>, %12, %cst_6 [0] : vector<2x8x128xf32> to vector<8x128xf32>
    %14 = arith.addf %10, %13 : vector<8x128xf32>
    %c0_7 = arith.constant 0 : index
    %c0_8 = arith.constant 0 : index
    %15 = vector.load %arg4[%c0_7, %c0_8] : memref<8x128xf32, #tpu.memory_space<vmem>>, vector<8x128xf32>
    tpu.vector_store %arg4[%c0_7, %c0_8], %14 {strides = array<i32>} : memref<8x128xf32, #tpu.memory_space<vmem>>, vector<8x128xf32>,
    %c0_9 = arith.constant 0 : index
    %c0_10 = arith.constant 0 : index
    %16 = vector.load %arg5[%c0_9, %c0_10] : memref<8x128xf32, #tpu.memory_space<vmem>>, vector<8x128xf32>
    %17 = vector.shape_cast %8 : vector<16x128xf32> to vector<2x8x128xf32>
    %cst_11 = arith.constant dense<0.000000e+00> : vector<8x128xf32>
    %18 = vector.multi_reduction <add>, %17, %cst_11 [0] : vector<2x8x128xf32> to vector<8x128xf32>
    %19 = arith.addf %16, %18 : vector<8x128xf32>
    %c0_12 = arith.constant 0 : index
    %c0_13 = arith.constant 0 : index
    %20 = vector.load %arg5[%c0_12, %c0_13] : memref<8x128xf32, #tpu.memory_space<vmem>>, vector<8x128xf32>
    tpu.vector_store %arg5[%c0_12, %c0_13], %19 {strides = array<i32>} : memref<8x128xf32, #tpu.memory_space<vmem>>, vector<8x128xf32>,
    %c0_14 = arith.constant 0 : index
    %c0_15 = arith.constant 0 : index
    %21 = vector.load %arg6[%c0_14, %c0_15] : memref<8x128xf32, #tpu.memory_space<vmem>>, vector<8x128xf32>
    %22 = vector.shape_cast %9 : vector<16x128xf32> to vector<2x8x128xf32>
    %cst_16 = arith.constant dense<0.000000e+00> : vector<8x128xf32>
    %23 = vector.multi_reduction <add>, %22, %cst_16 [0] : vector<2x8x128xf32> to vector<8x128xf32>
    %24 = arith.addf %21, %23 : vector<8x128xf32>
    %c0_17 = arith.constant 0 : index
    %c0_18 = arith.constant 0 : index
    %25 = vector.load %arg6[%c0_17, %c0_18] : memref<8x128xf32, #tpu.memory_space<vmem>>, vector<8x128xf32>
    tpu.vector_store %arg6[%c0_17, %c0_18], %24 {strides = array<i32>} : memref<8x128xf32, #tpu.memory_space<vmem>>, vector<8x128xf32>,
    %c0_i32_19 = arith.constant 0 : i32
    %26 = arith.cmpi eq, %arg0, %c0_i32_19 : i32
    %27 = arith.extui %26 : i1 to i32
    %c0_i32_20 = arith.constant 0 : i32
    %28 = arith.cmpi ne, %27, %c0_i32_20 : i32
    scf.if %28 {
      %c0_21 = arith.constant 0 : index
      %c0_22 = arith.constant 0 : index
      %29 = vector.load %arg4[%c0_21, %c0_22] : memref<8x128xf32, #tpu.memory_space<vmem>>, vector<8x128xf32>
      %30 = vector.shape_cast %29 : vector<8x128xf32> to vector<1x8x128xf32>
      %cst_23 = arith.constant dense<0.000000e+00> : vector<1xf32>
      %31 = vector.multi_reduction <add>, %30, %cst_23 [1, 2] : vector<1x8x128xf32> to vector<1xf32>
      %32 = vector.shape_cast %31 : vector<1xf32> to vector<1x1x1xf32>
      %33 = vector.extract %32[0, 0, 0] : f32 from vector<1x1x1xf32>
      %34 = vector.broadcast %33 : f32 to vector<1x1xf32>
      %c0_24 = arith.constant 0 : index
      %c0_25 = arith.constant 0 : index
      %35 = vector.load %arg5[%c0_24, %c0_25] : memref<8x128xf32, #tpu.memory_space<vmem>>, vector<8x128xf32>
      %36 = vector.shape_cast %35 : vector<8x128xf32> to vector<1x8x128xf32>
      %cst_26 = arith.constant dense<0.000000e+00> : vector<1xf32>
      %37 = vector.multi_reduction <add>, %36, %cst_26 [1, 2] : vector<1x8x128xf32> to vector<1xf32>
      %38 = vector.shape_cast %37 : vector<1xf32> to vector<1x1x1xf32>
      %39 = vector.extract %38[0, 0, 0] : f32 from vector<1x1x1xf32>
      %40 = vector.broadcast %39 : f32 to vector<1x1xf32>
      %c0_27 = arith.constant 0 : index
      %c0_28 = arith.constant 0 : index
      %41 = vector.load %arg6[%c0_27, %c0_28] : memref<8x128xf32, #tpu.memory_space<vmem>>, vector<8x128xf32>
      %42 = vector.shape_cast %41 : vector<8x128xf32> to vector<1x8x128xf32>
      %cst_29 = arith.constant dense<0.000000e+00> : vector<1xf32>
      %43 = vector.multi_reduction <add>, %42, %cst_29 [1, 2] : vector<1x8x128xf32> to vector<1xf32>
      %44 = vector.shape_cast %43 : vector<1xf32> to vector<1x1x1xf32>
      %45 = vector.extract %44[0, 0, 0] : f32 from vector<1x1x1xf32>
      %46 = vector.broadcast %45 : f32 to vector<1x1xf32>
      %cst_30 = arith.constant 1.000000e+00 : f32
      %47 = vector.broadcast %cst_30 : f32 to vector<1x1xf32>
      %48 = arith.addf %34, %47 : vector<1x1xf32>
      %49 = arith.addf %40, %46 : vector<1x1xf32>
      %50 = arith.subf %49, %34 : vector<1x1xf32>
      %cst_31 = arith.constant 1.000000e+00 : f32
      %51 = vector.broadcast %cst_31 : f32 to vector<1x1xf32>
      %52 = arith.addf %50, %51 : vector<1x1xf32>
      %53 = arith.divf %48, %52 : vector<1x1xf32>
      %cst_32 = arith.constant 1.000000e+00 : f32
      %54 = vector.broadcast %cst_32 : f32 to vector<1x1xf32>
      %55 = arith.subf %54, %53 : vector<1x1xf32>
      %c0_33 = arith.constant 0 : index
      %c0_34 = arith.constant 0 : index
      %56 = vector.load %arg3[%c0_33, %c0_34] : memref<1x1xf32, #tpu.memory_space<vmem>>, vector<1x1xf32>
      tpu.vector_store %arg3[%c0_33, %c0_34], %55 {strides = array<i32>} : memref<1x1xf32, #tpu.memory_space<vmem>>, vector<1x1xf32>,
    } else {
    }
    return
  }
  func.func @transform_0(%arg0: i32) -> (i32, i32) {
    %c0_i32 = arith.constant 0 : i32
    %c0_i32_0 = arith.constant 0 : i32
    return %arg0, %c0_i32 : i32, i32
  }
  func.func @transform_1(%arg0: i32) -> (i32, i32) {
    %c0_i32 = arith.constant 0 : i32
    %c0_i32_0 = arith.constant 0 : i32
    return %arg0, %c0_i32 : i32, i32
  }
  func.func @transform_2(%arg0: i32) -> (i32, i32) {
    %c0_i32 = arith.constant 0 : i32
    %c0_i32_0 = arith.constant 0 : i32
    %c0_i32_1 = arith.constant 0 : i32
    return %c0_i32, %c0_i32_0 : i32, i32
  }
}

</mosaic_0001>

<bundles_post_ra>
// kernel: tpu_custom_call.1
= control target key start
LH: loop header
LB: loop body
LE: loop exit
PB: predicated region body
PF: predicated region fallthrough
CT: control target
= control target key end

     0   :  { %7 = vsyncpa [#allocation6], 0  ;;  %s289_s0 = inlined_call_operand.hbm [shape: f32[16,128], index: 0, kind: input, shape index: {}]   ;;  %s290_s1 = inlined_call_operand.hbm [shape: f32[16,128], index: 1, kind: input, shape index: {}]   ;;  %s291_s2 = inlined_call_operand.hbm [shape: f32[1,1], index: 2, kind: output, shape index: {}]  }
   0x1   :  { %8 = vsyncpa [#allocation9], 0 }
   0x2   :  { %9 = vsyncpa [#allocation7], 0  ;;  %s233_s9 = smov [#allocation5]   ;;  %s161_s13 = scalar_lea.hbm %s289_s0, 256 }
   0x3   :  { %s15_s10 = sshll.u32 %s233_s9, 4  ;;  %p162_p0 = scmp.ne.s32.totalorder %s289_s0, %s161_s13  ;;  %s16_s10 = int_to_ptr.vmem [resolvable:$true] %s15_s10 }
   0x4   :  { %p165_p1 = scmp.lt.u32.totalorder %s161_s13, %s289_s0 }
   0x6   :  { %p167_p2 = pnand %p165_p1, %p162_p0 }
   0x8   :  { %170 = shalt.err (!%p167_p2)
}
   0x9   :  { %s171_s18 = scalar_lea.vmem %s16_s10, 256  ;;  %p176_p4 = scmp.lt.s32.totalorder %s16_s10, %s16_s10 }
   0xa   :  { %p172_p3 = scmp.ne.s32.totalorder %s16_s10, %s171_s18  ;;  %p177_p5 = scmp.lt.s32.totalorder %s171_s18, %s171_s18 }
   0xc   :  { %p178_p6 = por %p177_p5, %p176_p4 }
   0xe   :  { %p179_p7 = pnand %p178_p6, %p172_p3 }
  0x10   :  { %182 = shalt.err (!%p179_p7)
}
  0x11   :  { %s234_s19 = smov 128   ;;  %s235_s20 = smov 8  }
  0x12   :  { %21 = dma.hbm_to_vmem [thread:$0]  %s289_s0, 256, %s16_s10, [#allocation6], %s234_s19, %s234_s19, %s235_s20  }
  0x13   :  { %s236_s23 = smov [#allocation8]   ;;  %s183_s27 = scalar_lea.hbm %s290_s1, 256 }
  0x14   :  { %s27_s24 = sshll.u32 %s236_s23, 4  ;;  %p184_p8 = scmp.ne.s32.totalorder %s290_s1, %s183_s27  ;;  %s28_s24 = int_to_ptr.vmem [resolvable:$true] %s27_s24 }
  0x15   :  { %p187_p9 = scmp.lt.u32.totalorder %s183_s27, %s290_s1 }
  0x17   :  { %p189_p10 = pnand %p187_p9, %p184_p8 }
  0x19   :  { %192 = shalt.err (!%p189_p10)
}
  0x1a   :  { %s193_s4 = scalar_lea.vmem %s28_s24, 256  ;;  %p198_p12 = scmp.lt.s32.totalorder %s28_s24, %s28_s24 }
  0x1b   :  { %p194_p11 = scmp.ne.s32.totalorder %s28_s24, %s193_s4  ;;  %p199_p13 = scmp.lt.s32.totalorder %s193_s4, %s193_s4 }
  0x1d   :  { %p200_p0 = por %p199_p13, %p198_p12 }
  0x1f   :  { %p201_p1 = pnand %p200_p0, %p194_p11 }
  0x21   :  { %204 = shalt.err (!%p201_p1)
}
  0x22   :  { %33 = dma.hbm_to_vmem [thread:$0]  %s290_s1, 256, %s28_s24, [#allocation9], %s234_s19, %s234_s19, %s235_s20  }
  0x23   :  { %227 = dma.done.wait [#allocation6], 256  }
  0x24   :  { %228 = vsyncadd [#allocation6], 4294967040 }
  0x25   :  { %229 = dma.done.wait [#allocation9], 256  }
  0x26   :  { %230 = vsyncadd [#allocation9], 4294967040  ;;  %v61_v0 = vld [vmem:[#allocation8] sm:$0xff]  ;;  %v62_v1 = vld [vmem:[#allocation8 + $0x8] sm:$0xff]  ;;  %s237_s8 = smov [#allocation10]   ;;  %vm120_vm0 = vcmask 0  }
  0x27   :  { %v47_v2 = vld [vmem:[#allocation5] sm:$0xff]  ;;  %v74_v3 = vadd.f32 %v62_v1, %v61_v0  ;;  %v48_v4 = vld [vmem:[#allocation5 + $0x8] sm:$0xff]  ;;  %s128_s9 = sshll.u32 %s237_s8, 4  ;;  %s129_s9 = int_to_ptr.vmem [resolvable:$true] %s128_s9 }
  0x28   :  { %v138_v5 = vmul.f32 -1.442695, %v47_v2  ;;  %v139_v6 = vmul.f32 -1.442695, %v48_v4  ;;  %s205_s10 = scalar_lea.vmem %s129_s9, 16  ;;  %s209_s11 = scalar_lea.vmem %s129_s9, 32 }
  0x29   :  { %103 = vadd.xlane.f32.xlu1 %v74_v3  ;;  %p206_p2 = scmp.ne.s32.totalorder %s129_s9, %s205_s10  ;;  %p210_p3 = scmp.lt.s32.totalorder %s129_s9, %s129_s9 }
  0x2a   :  { %151 = vpow2.f32 %v138_v5  ;;  %p211_p4 = scmp.lt.s32.totalorder %s209_s11, %s205_s10 }
  0x2b   :  { %153 = vpow2.f32 %v139_v6 }
  0x2c   :  { %p212_p5 = por %p211_p4, %p210_p3 }
  0x2e   :  { %p213_p6 = pnand %p212_p5, %p206_p2 }
  0x34   :  { %v152_v7 = vpop.eup %151 }
  0x35   :  { %v154_v8 = vpop.eup %153  ;;  %v55_v9 = vadd.f32 1.0, %v152_v7 }
  0x36   :  { %v56_v10 = vadd.f32 1.0, %v154_v8 }
  0x37   :  { %155 = vrcp.f32 %v55_v9 }
  0x38   :  { %157 = vrcp.f32 %v56_v10 }
  0x41   :  { %v156_v11 = vpop.eup %155 }
  0x42   :  { %v158_v12 = vpop.eup %157  ;;  %v64_v13 = vmul.f32 %v156_v11, %v61_v0 }
  0x43   :  { %v65_v14 = vmul.f32 %v158_v12, %v62_v1  ;;  %v70_v16 = vadd.f32 %v158_v12, %v156_v11 }
  0x45   :  { %v66_v15 = vadd.f32 %v65_v14, %v64_v13 }
  0x47   :  { %81 = vadd.xlane.f32.xlu0 %v66_v15 }
  0x4b   :  { %92 = vadd.xlane.f32.xlu0 %v70_v16 }
  0xb6   :  { %v104_v17 = vpop.xlane.xlu1 %103 }
  0xb7   :  { %v105_v18 = vrot.slane %v104_v17, 4 }
  0xb9   :  { %v106_v19 = vadd.f32 %v105_v18, %v104_v17 }
  0xbb   :  { %v107_v23 = vrot.slane %v106_v19, 2 }
  0xbd   :  { %v108_v29 = vadd.f32 %v107_v23, %v106_v19 }
  0xbf   :  { %v109_v34 = vrot.slane %v108_v29, 1 }
  0xc1   :  { %v110_v37 = vadd.f32 %v109_v34, %v108_v29 }
  0xd4   :  { %v82_v20 = vpop.xlane.xlu0 %81 }
  0xd5   :  { %v83_v21 = vrot.slane %v82_v20, 4 }
  0xd7   :  { %v84_v22 = vadd.f32 %v83_v21, %v82_v20 }
  0xd8   :  { %v93_v24 = vpop.xlane.xlu0 %92 }
  0xd9   :  { %v85_v25 = vrot.slane %v84_v22, 2  ;;  %v94_v26 = vrot.slane %v93_v24, 4 }
  0xdb   :  { %v95_v27 = vadd.f32 %v94_v26, %v93_v24  ;;  %v86_v28 = vadd.f32 %v85_v25, %v84_v22 }
  0xdd   :  { %v96_v30 = vrot.slane %v95_v27, 2  ;;  %v87_v31 = vrot.slane %v86_v28, 1 }
  0xdf   :  { %v97_v32 = vadd.f32 %v96_v30, %v95_v27  ;;  %v88_v33 = vadd.f32 %v87_v31, %v86_v28 }
  0xe1   :  { %140 = vpush %v88_v33  ;;  %v98_v35 = vrot.slane %v97_v32, 1 }
  0xe3   :  { %v99_v36 = vadd.f32 %v98_v35, %v97_v32 }
  0xe5   :  { %142 = vpush %v99_v36 }
  0xe6   :  { %144 = vpush %v110_v37 }
 0x112   :  { %s141_s1 = spop %140 }
 0x113   :  { %v90_v41 = vstv %s141_s1 }
 0x114   :  { %v113_v44 = vadd.f32 1.0, %v90_v41 }
 0x116   :  { %s143_s6 = spop %142 }
 0x117   :  { %v101_v38 = vstv %s143_s6  ;;  %s145_s7 = spop %144 }
 0x118   :  { %v112_v39 = vstv %s145_s7 }
 0x119   :  { %v114_v40 = vadd.f32 %v112_v39, %v101_v38 }
 0x11b   :  { %v115_v42 = vsub.f32 %v114_v40, %v90_v41 }
 0x11d   :  { %v116_v43 = vadd.f32 1.0, %v115_v42 }
 0x11f   :  { %159 = vrcp.f32 %v116_v43 }
 0x129   :  { %v160_v45 = vpop.eup %159 }
 0x12a   :  { %v118_v46 = vmul.f32 %v160_v45, %v113_v44 }
 0x12c   :  { %v119_v47 = vsub.f32 1.0, %v118_v46 }
 0x12e   :  { %121 = vst.msk [vmem:[#allocation10] sm:$0x1] %vm120_vm0, %v119_v47 }
 0x12f   :  { %216 = shalt.err (!%p213_p6)
}
 0x130   :  { %s217_s14 = scalar_lea.hbm %s291_s2, 16 }
 0x131   :  { %p218_p7 = scmp.ne.s32.totalorder %s291_s2, %s217_s14  ;;  %p221_p8 = scmp.lt.u32.totalorder %s217_s14, %s291_s2 }
 0x133   :  { %p223_p9 = pnand %p221_p8, %p218_p7 }
 0x135   :  { %226 = shalt.err (!%p223_p9)
}
 0x136   :  { %131 = dma.vmem_to_hbm [thread:$0]  %s129_s9, 16, %s291_s2, [#allocation7]  }
 0x137   :  { %231 = dma.done.wait [#allocation7], 16  }
 0x138   :  { %232 = vsyncadd [#allocation7], 4294967280 }
 0x139   :  { %135 = vsyncpa [#allocation6], 1 }
 0x13a   :  { %136 = vsyncpa [#allocation9], 1 }
 0x13b   :  { %137 = vsyncpa [#allocation7], 1 }

</bundles_post_ra>
